<compile_context>
chip_gen: v5e
topology: v5e:2x2
jax: 0.10.0
libtpu: 0.0.40
codegen_flags: <defaults>
</compile_context>

<pallas_src>
import functools

import jax
import jax.numpy as jnp
from jax.experimental import pallas as pl
from jax.experimental.pallas import tpu as pltpu

_LANE = 128


def _sublane_multiple(dtype) -> int:
    # Minimum second-to-last tile dim: 8 for 4-byte, 16 for 2-byte, 32 for 1-byte.
    return max(8, 32 // jnp.dtype(dtype).itemsize)


def _dropout_kernel(seed_ref, x_ref, o_ref, *, threshold: int, inv_keep: float,
                    block_rows: int):
    shape = x_ref.shape  # (block_rows, 128)
    pid = pl.program_id(0)

    # Global flat element index of every element in this tile.
    row = jax.lax.broadcasted_iota(jnp.int32, shape, 0)
    col = jax.lax.broadcasted_iota(jnp.int32, shape, 1)
    gidx = ((pid * block_rows + row) * _LANE + col).astype(jnp.uint32)

    # Stateless counter-based PRNG: lowbias32 integer mixer of (index, seed).
    seed = seed_ref[0].astype(jnp.uint32)
    k = gidx ^ (seed * jnp.uint32(0x9E3779B9))
    k = k ^ (k >> 16)
    k = k * jnp.uint32(0x7FEB352D)
    k = k ^ (k >> 15)
    k = k * jnp.uint32(0x846CA68B)
    k = k ^ (k >> 16)

    x = x_ref[...]
    scaled = x * jnp.asarray(inv_keep, dtype=x.dtype)
    # torch semantics: mask = rand < p ; where(mask, 0, x / (1 - p))
    o_ref[...] = jnp.where(k < jnp.uint32(threshold), jnp.zeros_like(scaled), scaled)


def dropout(x: jax.Array, p: float, seed: int, training: bool = True,
            block_rows: int = 1024) -> jax.Array:
    """Pallas TPU dropout matching the reference nn.Module forward."""
    assert 0.0 <= p < 1.0, "p is a probability from 0 to 1"
    if not training or p == 0.0:
        return x

    orig_shape = x.shape
    total = x.size
    rows = pl.cdiv(total, _LANE)

    # Tile sizing: big lane-dense tiles, dtype-aware sublane multiple.
    mult = _sublane_multiple(x.dtype)
    br = min(int(block_rows), rows)
    br = mult * pl.cdiv(max(br, 1), mult)
    padded_rows = br * pl.cdiv(rows, br)

    flat = x.reshape(-1)
    pad = padded_rows * _LANE - total
    if pad:
        flat = jnp.pad(flat, (0, pad))
    x2 = flat.reshape(padded_rows, _LANE)

    seed_arr = jnp.asarray([seed], dtype=jnp.int32)
    # Exact integer threshold: drop iff hash_bits < floor(p * 2^32).
    threshold = min(int(float(p) * (1 << 32)), (1 << 32) - 1)
    kernel = functools.partial(
        _dropout_kernel,
        threshold=threshold,
        inv_keep=1.0 / (1.0 - float(p)),
        block_rows=br,
    )

    grid = (padded_rows // br,)
    out2 = pl.pallas_call(
        kernel,
        out_shape=jax.ShapeDtypeStruct((padded_rows, _LANE), x.dtype),
        grid_spec=pltpu.PrefetchScalarGridSpec(
            num_scalar_prefetch=1,
            grid=grid,
            in_specs=[pl.BlockSpec((br, _LANE), lambda i, seed_ref: (i, 0))],
            out_specs=pl.BlockSpec((br, _LANE), lambda i, seed_ref: (i, 0)),
        ),
        compiler_params=pltpu.CompilerParams(
            # Tiles are fully independent (stateless hash PRNG) -> parallel grid
            # (up to ~2x on v7x's dual TensorCores, free on v5e/v6e).
            dimension_semantics=("parallel",),
        ),
    )(seed_arr, x2)

    out_flat = out2.reshape(-1)
    if pad:
        out_flat = out_flat[:total]
    return out_flat.reshape(orig_shape)


if __name__ == "__main__":
    key = jax.random.PRNGKey(0)
    # Small NCHW-style input consistent with a typical conv activation.
    x = jax.random.normal(key, (2, 4, 16, 16), dtype=jnp.float32)
    p = 0.25

    # Training mode (mask + inverted scaling).
    y = jax.block_until_ready(dropout(x, p=p, seed=0, training=True))

    # Sanity: surviving entries equal x / (1 - p); dropped fraction plausible.
    keep = y != 0.0
    expected = x * (1.0 / (1.0 - p))
    assert bool(jnp.all(jnp.where(keep, jnp.abs(y - expected) < 1e-5, True)))
    drop_frac = 1.0 - float(jnp.mean(keep.astype(jnp.float32)))
    assert 0.10 < drop_frac < 0.45, f"drop fraction {drop_frac} implausible for p={p}"

    # Awkward shape (numel not a multiple of 128) exercises the cdiv/padding path.
    x_odd = jax.random.normal(jax.random.PRNGKey(1), (3, 5, 7), dtype=jnp.float32)
    y_odd = jax.block_until_ready(dropout(x_odd, p=p, seed=3, training=True))
    keep_odd = y_odd != 0.0
    exp_odd = x_odd * (1.0 / (1.0 - p))
    assert bool(jnp.all(jnp.where(keep_odd, jnp.abs(y_odd - exp_odd) < 1e-5, True)))
    drop_odd = 1.0 - float(jnp.mean(keep_odd.astype(jnp.float32)))
    assert 0.0 < drop_odd < 0.7, f"drop fraction {drop_odd} implausible for p={p}"

    # Eval mode: identity.
    y_eval = jax.block_until_ready(dropout(x, p=p, seed=0, training=False))
    assert bool(jnp.all(y_eval == x))

    print("KERNEL_OK")
</pallas_src>

<mosaic_0001>
module attributes {stable_mosaic.version = 11 : i64} {
  func.func @_dropout_kernel(%arg0: i32, %arg1: memref<1xi32, #tpu.memory_space<smem>>, %arg2: memref<16x128xf32, #tpu.memory_space<vmem>>, %arg3: memref<16x128xf32, #tpu.memory_space<vmem>>) attributes {dimension_semantics = [#tpu.dimension_semantics<parallel>], iteration_bounds = array<i64: 1>, scalar_prefetch = 1 : i64, scratch_operands = 0 : i64, tpu.core_type = #tpu.core_type<tc>, window_params = [{transform_indices = @transform_0, window_bounds = array<i64: 16, 128>}, {transform_indices = @transform_1, window_bounds = array<i64: 16, 128>}]} {
    %0 = tpu.iota {dimensions = array<i32: 0>} : vector<16x128xi32>
    %1 = tpu.iota {dimensions = array<i32: 1>} : vector<16x128xi32>
    %c16_i32 = arith.constant 16 : i32
    %2 = arith.muli %arg0, %c16_i32 : i32
    %3 = vector.broadcast %2 : i32 to vector<16x128xi32>
    %4 = arith.addi %3, %0 : vector<16x128xi32>
    %c128_i32 = arith.constant 128 : i32
    %5 = vector.broadcast %c128_i32 : i32 to vector<16x128xi32>
    %6 = arith.muli %4, %5 : vector<16x128xi32>
    %7 = arith.addi %6, %1 : vector<16x128xi32>
    %c0 = arith.constant 0 : index
    %8 = memref.load %arg1[%c0] : memref<1xi32, #tpu.memory_space<smem>>
    %c-1640531527_i32 = arith.constant -1640531527 : i32
    %9 = arith.muli %8, %c-1640531527_i32 : i32
    %10 = vector.broadcast %9 : i32 to vector<16x128xi32>
    %11 = arith.xori %7, %10 : vector<16x128xi32>
    %c16_i32_0 = arith.constant 16 : i32
    %12 = vector.broadcast %c16_i32_0 : i32 to vector<16x128xi32>
    %13 = arith.shrui %11, %12 : vector<16x128xi32>
    %14 = arith.xori %11, %13 : vector<16x128xi32>
    %c2146121005_i32 = arith.constant 2146121005 : i32
    %15 = vector.broadcast %c2146121005_i32 : i32 to vector<16x128xi32>
    %16 = arith.muli %14, %15 : vector<16x128xi32>
    %c15_i32 = arith.constant 15 : i32
    %17 = vector.broadcast %c15_i32 : i32 to vector<16x128xi32>
    %18 = arith.shrui %16, %17 : vector<16x128xi32>
    %19 = arith.xori %16, %18 : vector<16x128xi32>
    %c-2073254261_i32 = arith.constant -2073254261 : i32
    %20 = vector.broadcast %c-2073254261_i32 : i32 to vector<16x128xi32>
    %21 = arith.muli %19, %20 : vector<16x128xi32>
    %c16_i32_1 = arith.constant 16 : i32
    %22 = vector.broadcast %c16_i32_1 : i32 to vector<16x128xi32>
    %23 = arith.shrui %21, %22 : vector<16x128xi32>
    %24 = arith.xori %21, %23 : vector<16x128xi32>
    %c0_2 = arith.constant 0 : index
    %c0_3 = arith.constant 0 : index
    %25 = vector.load %arg2[%c0_2, %c0_3] : memref<16x128xf32, #tpu.memory_space<vmem>>, vector<16x128xf32>
    %cst = arith.constant 1.33333337 : f32
    %26 = vector.broadcast %cst : f32 to vector<16x128xf32>
    %27 = arith.mulf %25, %26 : vector<16x128xf32>
    %c1073741824_i32 = arith.constant 1073741824 : i32
    %28 = vector.broadcast %c1073741824_i32 : i32 to vector<16x128xi32>
    %29 = arith.cmpi ult, %24, %28 : vector<16x128xi32>
    %cst_4 = arith.constant 0.000000e+00 : f32
    %30 = vector.broadcast %cst_4 : f32 to vector<16x128xf32>
    %31 = arith.select %29, %30, %27 : vector<16x128xi1>, vector<16x128xf32>
    %c0_5 = arith.constant 0 : index
    %c0_6 = arith.constant 0 : index
    %32 = vector.load %arg3[%c0_5, %c0_6] : memref<16x128xf32, #tpu.memory_space<vmem>>, vector<16x128xf32>
    tpu.vector_store %arg3[%c0_5, %c0_6], %31 {strides = array<i32>} : memref<16x128xf32, #tpu.memory_space<vmem>>, vector<16x128xf32>,
    return
  }
  func.func @transform_0(%arg0: i32, %arg1: memref<1xi32, #tpu.memory_space<smem>>) -> (i32, i32) {
    %c0_i32 = arith.constant 0 : i32
    %c0_i32_0 = arith.constant 0 : i32
    return %arg0, %c0_i32 : i32, i32
  }
  func.func @transform_1(%arg0: i32, %arg1: memref<1xi32, #tpu.memory_space<smem>>) -> (i32, i32) {
    %c0_i32 = arith.constant 0 : i32
    %c0_i32_0 = arith.constant 0 : i32
    return %arg0, %c0_i32 : i32, i32
  }
}

</mosaic_0001>

<bundles_post_ra>
// kernel: tpu_custom_call.1
= control target key start
LH: loop header
LB: loop body
LE: loop exit
PB: predicated region body
PF: predicated region fallthrough
CT: control target
= control target key end

     0   :  { %8 = vsyncpa [#allocation5], 0  ;;  %s186_s0 = inlined_call_operand.<no memory space> [shape: s32[1], index: 0, kind: input, shape index: {}]   ;;  %s187_s1 = inlined_call_operand.hbm [shape: f32[16,128], index: 1, kind: input, shape index: {}]   ;;  %s188_s2 = inlined_call_operand.hbm [shape: f32[16,128], index: 2, kind: output, shape index: {}]  }
   0x1   :  { %9 = vsyncpa [#allocation6], 0  ;;  %s14_s11 = sshll.u32 %s187_s1, 4  ;;  %s152_s12 = smov [#allocation4]   ;;  %s15_s11 = int_to_ptr.hbm [resolvable:$true] %s14_s11 }
   0x2   :  { %s16_s13 = sshll.u32 %s152_s12, 4  ;;  %s153_s14 = smov 128   ;;  %s17_s13 = int_to_ptr.vmem [resolvable:$true] %s16_s13 }
   0x3   :  { %s154_s15 = smov 8  }
   0x4   :  { %22 = dma.hbm_to_vmem [thread:$0]  %s15_s11, 256, %s17_s13, [#allocation5], %s153_s14, %s153_s14, %s154_s15  }
   0x5   :  { %148 = dma.done.wait [#allocation5], 256  }
   0x6   :  { %149 = vsyncadd [#allocation5], 4294967040  ;;  %v27_v0 = vlaneseq  ;;  %s41_s18 = smul.u32 2654435769, %s186_s0  ;;  %v61_v23 = vld [vmem:[#allocation4] sm:$0xff]  ;;  %v62_v27 = vld [vmem:[#allocation4 + $0x8] sm:$0xff] }
   0x7   :  { %v63_v28 = vmul.f32 1.3333334, %v61_v23  ;;  %v64_v31 = vmul.f32 1.3333334, %v62_v27  ;;  %s155_s0 = smov [#allocation7]   ;;  %s81_s21 = sshll.u32 %s188_s2, 4  ;;  %s82_s21 = int_to_ptr.hbm [resolvable:$true] %s81_s21 }
   0x8   :  { %v28_v1 = vshrl.u32 %v27_v0, 7  ;;  %v31_v2 = vand.u32 127, %v27_v0  ;;  %v42_v5 = vstv %s41_s18  ;;  %s79_s1 = sshll.u32 %s155_s0, 4  ;;  %s80_s1 = int_to_ptr.vmem [resolvable:$true] %s79_s1 }
   0xa   :  { %v36_v3 = vmul.u32 128, %v28_v1  ;;  %v29_v4 = vadd.s32 8, %v28_v1 }
   0xc   :  { %v38_v6 = vadd.s32 %v36_v3, %v31_v2  ;;  %v37_v7 = vmul.u32 128, %v29_v4 }
   0xe   :  { %v43_v8 = vxor.u32 %v42_v5, %v38_v6  ;;  %v39_v9 = vadd.s32 %v37_v7, %v31_v2 }
  0x10   :  { %v45_v10 = vshrl.u32 %v43_v8, 16  ;;  %v44_v11 = vxor.u32 %v42_v5, %v39_v9 }
  0x12   :  { %v47_v12 = vxor.u32 %v45_v10, %v43_v8  ;;  %v46_v13 = vshrl.u32 %v44_v11, 16 }
  0x14   :  { %v49_v14 = vmul.u32 2146121005, %v47_v12  ;;  %v48_v15 = vxor.u32 %v46_v13, %v44_v11 }
  0x16   :  { %v51_v16 = vshrl.u32 %v49_v14, 15  ;;  %v50_v17 = vmul.u32 2146121005, %v48_v15 }
  0x18   :  { %v53_v18 = vxor.u32 %v51_v16, %v49_v14  ;;  %v52_v19 = vshrl.u32 %v50_v17, 15 }
  0x1a   :  { %v55_v20 = vmul.u32 2221713035, %v53_v18  ;;  %v54_v21 = vxor.u32 %v52_v19, %v50_v17 }
  0x1c   :  { %v57_v22 = vshrl.u32 %v55_v20, 16  ;;  %v56_v24 = vmul.u32 2221713035, %v54_v21 }
  0x1e   :  { %v59_v25 = vxor.u32 %v57_v22, %v55_v20  ;;  %v58_v26 = vshrl.u32 %v56_v24, 16 }
  0x20   :  { %v94_v29 = vxor.u32 2147483648, %v59_v25  ;;  %v60_v30 = vxor.u32 %v58_v26, %v56_v24 }
  0x22   :  { %vm67_vm0 = vcmp.lt.s32.totalorder %v94_v29, 3221225472  ;;  %v95_v32 = vxor.u32 2147483648, %v60_v30 }
  0x23   :  { %v71_v33 = vsel %vm67_vm0, 0.0, %v63_v28 }
  0x24   :  { %73 = vst [vmem:[#allocation7] sm:$0xff] %v71_v33  ;;  %vm70_vm1 = vcmp.lt.s32.totalorder %v95_v32, 3221225472 }
  0x25   :  { %v72_v34 = vsel %vm70_vm1, 0.0, %v64_v31 }
  0x26   :  { %74 = vst [vmem:[#allocation7 + $0x8] sm:$0xff] %v72_v34 }
  0x27   :  { %87 = dma.vmem_to_hbm [thread:$0]  %s80_s1, 256, %s82_s21, [#allocation6], %s153_s14, %s153_s14, %s154_s15  }
  0x28   :  { %150 = dma.done.wait [#allocation6], 256  }
  0x29   :  { %151 = vsyncadd [#allocation6], 4294967040 }
  0x2a   :  { %92 = vsyncpa [#allocation5], 1 }
  0x2b   :  { %93 = vsyncpa [#allocation6], 1 }

</bundles_post_ra>
